<compile_context>
chip_gen: v7x
topology: tpu7x:2x2x1
jax: 0.10.0
libtpu: 0.0.40
codegen_flags: <defaults>
</compile_context>

<pallas_src>
import functools
import math

import jax
import jax.numpy as jnp
from jax.experimental import pallas as pl
from jax.experimental.pallas import tpu as pltpu


_NEG_INF = -1e30  # finite "minus infinity": no inf-inf NaNs in the online update


def _instance_loss_kernel(z_row_ref, z_col_ref, o_ref,
                          m_scr, l_scr, pos_scr,
                          *, half_blocks, n_blocks, pad, block_m):
    ri = pl.program_id(0)   # row block index    (parallel)
    cj = pl.program_id(1)   # column block index (reduction, innermost)

    @pl.when(cj == 0)
    def _init():
        m_scr[...] = jnp.full_like(m_scr, _NEG_INF)
        l_scr[...] = jnp.zeros_like(l_scr)
        pos_scr[...] = jnp.zeros_like(pos_scr)

    # (TM, TN) logits tile on the MXU.  1/temperature is already folded into z
    # (the wrapper pre-scales by temperature**-0.5 in f32), so both tiles go to
    # the MXU untouched: no per-step VPU rescale, no extra VMEM temp.  Contract
    # on the last (lane) dim of both operands -> no transpose/relayout; operands
    # stay in the input dtype (bf16 -> full-rate MXU), accumulation is f32.
    s = jax.lax.dot_general(
        z_row_ref[...], z_col_ref[...],
        dimension_numbers=(((1,), (1,)), ((), ())),
        preferred_element_type=jnp.float32)

    # Self-similarity (diagonal) mask: only the cj == ri tile intersects the
    # diagonal, so gate the iota/compare/select behind real control flow
    # instead of paying ~4 O(TM*TN) VPU ops on every off-diagonal tile.
    def _mask_diag(t):
        r = jax.lax.broadcasted_iota(jnp.int32, t.shape, 0)
        c = jax.lax.broadcasted_iota(jnp.int32, t.shape, 1)
        return jnp.where(r == c, _NEG_INF, t)

    s = jax.lax.cond(ri == cj, _mask_diag, lambda t: t, s)

    # Row-padding mask (only compiled in when N was padded): padded rows of z
    # are all-zero, and as *columns* they must not leak into any real row's
    # logsumexp.  They occupy the last `pad` lanes of exactly two column
    # blocks (the last block of each half), so gate on those blocks only.
    if pad:
        def _mask_pad_cols(t):
            c = jax.lax.broadcasted_iota(jnp.int32, t.shape, 1)
            return jnp.where(c >= block_m - pad, _NEG_INF, t)

        is_pad_block = jnp.logical_or(cj == half_blocks - 1, cj == n_blocks - 1)
        s = jax.lax.cond(is_pad_block, _mask_pad_cols, lambda t: t, s)

    # Online (flash-style) logsumexp across the streamed column blocks.
    m_prev = m_scr[...]
    m_new = jnp.maximum(m_prev, jnp.max(s, axis=1, keepdims=True))
    l_scr[...] = (jnp.exp(m_prev - m_new) * l_scr[...]
                  + jnp.sum(jnp.exp(s - m_new), axis=1, keepdims=True))
    m_scr[...] = m_new

    # Positive logit: for row block ri it lies on the local diagonal of column
    # block (ri + half_blocks) % n_blocks (never the diagonal tile, since
    # n_blocks = 2*half_blocks).  Pull it straight out of the MXU output `s`
    # (bitwise-consistent with the logsumexp logits) instead of recomputing an
    # O(TM*D) f32 row-dot.
    @pl.when(cj == (ri + half_blocks) % n_blocks)
    def _positives():
        r = jax.lax.broadcasted_iota(jnp.int32, s.shape, 0)
        c = jax.lax.broadcasted_iota(jnp.int32, s.shape, 1)
        pos_scr[...] = jnp.sum(jnp.where(r == c, s, 0.0), axis=1, keepdims=True)

    # Finalize this row block: per-row term = logsumexp_{j != i} sim - positive.
    @pl.when(cj == n_blocks - 1)
    def _finalize():
        # TODO(synk): a lane-dense (1, block_m) output block would give
        # unmasked full-lane stores; kept (block_m, 1) since this store only
        # happens once per row block (negligible vs. the column stream).
        o_ref[...] = (m_scr[...] + jnp.log(l_scr[...])) - pos_scr[...]


def _round_up(x, m):
    return (x + m - 1) // m * m


def _choose_block(b, target):
    """Pick (block_m, b_pad) for one half of z.

    block_m is a multiple of 8 (multiple of 128 once b >= 128, for lane-aligned
    logits tiles and good MXU utilization), capped at `target`.  b_pad is the
    smallest multiple of block_m >= b; we minimize b_pad (padding overhead) and
    break ties toward the larger block (fewer grid steps, less HBM streaming).
    """
    step = 128 if b >= 128 else 8
    hi = min(max(int(target), step), _round_up(b, step))
    hi -= hi % step
    best_bm, best_bp = step, _round_up(b, step)
    for bm in range(step, hi + 1, step):
        bp = _round_up(b, bm)
        if (bp, -bm) < (best_bp, -best_bm):
            best_bm, best_bp = bm, bp
    return best_bm, best_bp


def instance_loss(z_i, z_j, temperature, *, block=512, compute_dtype=None):
    """Pallas implementation of InstanceLoss.forward(z_i, z_j)."""
    assert z_i.ndim == 2 and z_i.shape == z_j.shape
    assert float(temperature) > 0.0
    b, d = z_i.shape
    n = 2 * b

    cdtype = jnp.dtype(compute_dtype) if compute_dtype is not None else z_i.dtype

    # Tile choice: the row-block count (2 * half_blocks) is always even and
    # >= 2, so the "parallel" row axis feeds both v7x TensorCores.
    block_m, b_pad = _choose_block(b, block)
    pad_rows = b_pad - b
    half_blocks = b_pad // block_m
    n_blocks = 2 * half_blocks
    n_pad = 2 * b_pad

    # Fold 1/temperature into z ONCE, in f32, before any low-precision cast:
    # (z * T**-0.5) @ (z * T**-0.5).T == (z @ z.T) / T, and the positive logit
    # (taken from the same MXU output) picks up 1/T automatically.  This
    # removes the per-grid-step rescale of the row tile from the kernel.
    inv_sqrt_t = 1.0 / math.sqrt(float(temperature))

    def _prep(x):
        x = (x.astype(jnp.float32) * inv_sqrt_t).astype(cdtype)
        if pad_rows:
            x = jnp.pad(x, ((0, pad_rows), (0, 0)))  # zero rows, masked in-kernel
        return x

    # TODO(synk): the concat costs one extra O(N*D) HBM round-trip; a BlockSpec
    # index_map cannot pick between two separate operands, so it stays.
    z = jnp.concatenate([_prep(z_i), _prep(z_j)], axis=0)

    # Pad the feature dim to a multiple of 128 lanes (zeros don't change the
    # dot products) so the MXU contracts full-width tiles.
    lane_pad = (-d) % 128
    if lane_pad:
        z = jnp.pad(z, ((0, 0), (0, lane_pad)))
    d_padded = d + lane_pad

    kernel = functools.partial(
        _instance_loss_kernel,
        half_blocks=half_blocks, n_blocks=n_blocks,
        pad=pad_rows, block_m=block_m)

    grid_spec = pltpu.PrefetchScalarGridSpec(
        num_scalar_prefetch=0,
        grid=(n_blocks, n_blocks),
        in_specs=[
            # row tile: block index constant along cj -> fetched once per row block
            pl.BlockSpec((block_m, d_padded), lambda ri, cj: (ri, 0)),
            # column tile: streamed along the innermost (reduction) axis,
            # double-buffered by the default BlockSpec pipeline.
            # TODO(synk): if profiling shows the column DMA still exposed with
            # the larger tiles, add pipeline_mode=pl.Buffered(3) here.
            pl.BlockSpec((block_m, d_padded), lambda ri, cj: (cj, 0)),
        ],
        out_specs=pl.BlockSpec((block_m, 1), lambda ri, cj: (ri, 0)),
        scratch_shapes=[pltpu.VMEM((block_m, 1), jnp.float32)] * 3,  # m, l, pos
    )

    # VMEM budget: double-buffered row + column tiles, the f32 logits tile and
    # scratch; capped at v7x's 64 MiB physical VMEM (v5e/v6e have 128 MiB, but
    # their default scoped limit of 16/32 MiB is what the explicit value lifts).
    itemsize = jnp.dtype(cdtype).itemsize
    est = (4 * block_m * d_padded * itemsize        # 2 buffers x (row + col) tile
           + 4 * block_m * block_m                  # f32 logits tile
           + 3 * block_m * 4 + (1 << 20))           # scratch + slack
    vmem_limit = int(min(64 * 1024 * 1024, max(32 * 1024 * 1024, 2 * est)))

    per_row = pl.pallas_call(
        kernel,
        out_shape=jax.ShapeDtypeStruct((n_pad, 1), jnp.float32),
        grid_spec=grid_spec,
        compiler_params=pltpu.CompilerParams(
            dimension_semantics=("parallel", "arbitrary"),
            vmem_limit_bytes=vmem_limit),
    )(z, z)

    # Only the real rows contribute; padded rows are simply dropped here.
    loss_sum = jnp.sum(per_row[:b]) + jnp.sum(per_row[b_pad:b_pad + b])
    return loss_sum / n


def instance_loss_ref(z_i, z_j, temperature):
    """Pure-JAX reference mirroring the PyTorch forward, for verification."""
    z = jnp.concatenate([z_i, z_j], axis=0).astype(jnp.float32)
    n = z.shape[0]
    b = n // 2
    sim = jnp.dot(z, z.T, precision=jax.lax.Precision.HIGHEST) / temperature
    row = jnp.arange(n)
    pos = sim[row, (row + b) % n]
    sim_no_diag = jnp.where(jnp.eye(n, dtype=bool), -jnp.inf, sim)
    lse = jax.scipy.special.logsumexp(sim_no_diag, axis=1)
    return jnp.sum(lse - pos) / n


if __name__ == "__main__":
    temperature = 0.5
    keys = jax.random.split(jax.random.PRNGKey(0), 8)

    # 1) Tiny shape consistent with the module's forward (batch, feature);
    #    feature dim needs lane padding.
    z_i = jax.random.normal(keys[0], (8, 32), jnp.float32)
    z_j = jax.random.normal(keys[1], (8, 32), jnp.float32)
    loss = jax.block_until_ready(instance_loss(z_i, z_j, temperature))
    ref = jax.block_until_ready(instance_loss_ref(z_i, z_j, temperature))
    assert jnp.allclose(loss, ref, rtol=1e-3, atol=1e-3), (loss, ref)

    # 2) Multiple row/column blocks (4x4 grid), lane-aligned feature dim, f32.
    z_i2 = jax.random.normal(keys[2], (64, 128), jnp.float32)
    z_j2 = jax.random.normal(keys[3], (64, 128), jnp.float32)
    loss2 = jax.block_until_ready(instance_loss(z_i2, z_j2, temperature, block=32))
    ref2 = jax.block_until_ready(instance_loss_ref(z_i2, z_j2, temperature))
    assert jnp.allclose(loss2, ref2, rtol=1e-3, atol=1e-3), (loss2, ref2)

    # 3) bf16 MXU path (full-rate matmul, f32 accumulation); reference uses
    #    bf16-quantized inputs (the kernel quantizes after the f32 pre-scale,
    #    so allow a slightly looser tolerance).
    loss3 = jax.block_until_ready(
        instance_loss(z_i2, z_j2, temperature, block=32,
                      compute_dtype=jnp.bfloat16))
    ref3 = jax.block_until_ready(
        instance_loss_ref(z_i2.astype(jnp.bfloat16).astype(jnp.float32),
                          z_j2.astype(jnp.bfloat16).astype(jnp.float32),
                          temperature))
    assert jnp.allclose(loss3, ref3, rtol=1e-2, atol=1e-2), (loss3, ref3)

    # 4) Batch with no multiple-of-8 divisor -> row-padding + column-mask path.
    z_i4 = jax.random.normal(keys[4], (50, 96), jnp.float32)
    z_j4 = jax.random.normal(keys[5], (50, 96), jnp.float32)
    loss4 = jax.block_until_ready(instance_loss(z_i4, z_j4, temperature))
    ref4 = jax.block_until_ready(instance_loss_ref(z_i4, z_j4, temperature))
    assert jnp.allclose(loss4, ref4, rtol=1e-3, atol=1e-3), (loss4, ref4)

    # 5) The module's actual batch_size=300 (pads each half 300 -> 384).
    z_i5 = jax.random.normal(keys[6], (300, 64), jnp.float32)
    z_j5 = jax.random.normal(keys[7], (300, 64), jnp.float32)
    loss5 = jax.block_until_ready(instance_loss(z_i5, z_j5, temperature))
    ref5 = jax.block_until_ready(instance_loss_ref(z_i5, z_j5, temperature))
    assert jnp.allclose(loss5, ref5, rtol=1e-3, atol=1e-3), (loss5, ref5)

    print("KERNEL_OK")
</pallas_src>

<mosaic_0001>
module attributes {stable_mosaic.version = 11 : i64} {
  func.func @_instance_loss_kernel(%arg0: i32, %arg1: i32, %arg2: memref<8x128xf32, #tpu.memory_space<vmem>>, %arg3: memref<8x128xf32, #tpu.memory_space<vmem>>, %arg4: memref<8x1xf32, #tpu.memory_space<vmem>>, %arg5: memref<8x1xf32, #tpu.memory_space<vmem>>, %arg6: memref<8x1xf32, #tpu.memory_space<vmem>>, %arg7: memref<8x1xf32, #tpu.memory_space<vmem>>) attributes {dimension_semantics = [#tpu.dimension_semantics<parallel>, #tpu.dimension_semantics<arbitrary>], iteration_bounds = array<i64: 2, 2>, scalar_prefetch = 0 : i64, scratch_operands = 3 : i64, tpu.core_type = #tpu.core_type<tc>, window_params = [{transform_indices = @transform_0, window_bounds = array<i64: 8, 128>}, {transform_indices = @transform_1, window_bounds = array<i64: 8, 128>}, {transform_indices = @transform_2, window_bounds = array<i64: 8, 1>}]} {
    %c0_i32 = arith.constant 0 : i32
    %0 = arith.cmpi eq, %arg1, %c0_i32 : i32
    %1 = arith.extui %0 : i1 to i32
    %c0_i32_0 = arith.constant 0 : i32
    %2 = arith.cmpi ne, %1, %c0_i32_0 : i32
    scf.if %2 {
      %cst_23 = arith.constant -1.000000e+30 : f32
      %43 = vector.broadcast %cst_23 : f32 to vector<8x1xf32>
      %c0_24 = arith.constant 0 : index
      %c0_25 = arith.constant 0 : index
      %44 = vector.load %arg5[%c0_24, %c0_25] : memref<8x1xf32, #tpu.memory_space<vmem>>, vector<8x1xf32>
      tpu.vector_store %arg5[%c0_24, %c0_25], %43 {strides = array<i32>} : memref<8x1xf32, #tpu.memory_space<vmem>>, vector<8x1xf32>,
      %cst_26 = arith.constant 0.000000e+00 : f32
      %45 = vector.broadcast %cst_26 : f32 to vector<8x1xf32>
      %c0_27 = arith.constant 0 : index
      %c0_28 = arith.constant 0 : index
      %46 = vector.load %arg6[%c0_27, %c0_28] : memref<8x1xf32, #tpu.memory_space<vmem>>, vector<8x1xf32>
      tpu.vector_store %arg6[%c0_27, %c0_28], %45 {strides = array<i32>} : memref<8x1xf32, #tpu.memory_space<vmem>>, vector<8x1xf32>,
      %cst_29 = arith.constant 0.000000e+00 : f32
      %47 = vector.broadcast %cst_29 : f32 to vector<8x1xf32>
      %c0_30 = arith.constant 0 : index
      %c0_31 = arith.constant 0 : index
      %48 = vector.load %arg7[%c0_30, %c0_31] : memref<8x1xf32, #tpu.memory_space<vmem>>, vector<8x1xf32>
      tpu.vector_store %arg7[%c0_30, %c0_31], %47 {strides = array<i32>} : memref<8x1xf32, #tpu.memory_space<vmem>>, vector<8x1xf32>,
    } else {
    }
    %c0 = arith.constant 0 : index
    %c0_1 = arith.constant 0 : index
    %3 = vector.load %arg2[%c0, %c0_1] : memref<8x128xf32, #tpu.memory_space<vmem>>, vector<8x128xf32>
    %c0_2 = arith.constant 0 : index
    %c0_3 = arith.constant 0 : index
    %4 = vector.load %arg3[%c0_2, %c0_3] : memref<8x128xf32, #tpu.memory_space<vmem>>, vector<8x128xf32>
    %cst = arith.constant dense<0.000000e+00> : vector<8x8xf32>
    %5 = tpu.matmul %3, %4, %cst {dimension_numbers = #tpu.dot_dimension_numbers<[1], [1], [0], [0], [0, 0, 1, 0], [], []>} : vector<8x128xf32>, vector<8x128xf32>, vector<8x8xf32> -> vector<8x8xf32>
    %6 = arith.cmpi eq, %arg0, %arg1 : i32
    %7 = arith.extui %6 : i1 to i32
    %c0_i32_4 = arith.constant 0 : i32
    %8 = arith.cmpi ne, %7, %c0_i32_4 : i32
    %9 = scf.if %8 -> (vector<8x8xf32>) {
      %43 = tpu.iota {dimensions = array<i32: 0>} : vector<8x8xi32>
      %44 = tpu.iota {dimensions = array<i32: 1>} : vector<8x8xi32>
      %45 = arith.cmpi eq, %43, %44 : vector<8x8xi32>
      %cst_23 = arith.constant -1.000000e+30 : f32
      %46 = vector.broadcast %cst_23 : f32 to vector<8x8xf32>
      %47 = arith.select %45, %46, %5 : vector<8x8xi1>, vector<8x8xf32>
      scf.yield %47 : vector<8x8xf32>
    } else {
      scf.yield %5 : vector<8x8xf32>
    }
    %c0_5 = arith.constant 0 : index
    %c0_6 = arith.constant 0 : index
    %10 = vector.load %arg5[%c0_5, %c0_6] : memref<8x1xf32, #tpu.memory_space<vmem>>, vector<8x1xf32>
    %cst_7 = arith.constant dense<0xFF800000> : vector<8xf32>
    %11 = vector.multi_reduction <maximumf>, %9, %cst_7 [1] : vector<8x8xf32> to vector<8xf32>
    %12 = vector.shape_cast %11 : vector<8xf32> to vector<8x1xf32>
    %13 = arith.maximumf %10, %12 : vector<8x1xf32>
    %14 = arith.subf %10, %13 : vector<8x1xf32>
    %15 = math.exp %14 : vector<8x1xf32>
    %c0_8 = arith.constant 0 : index
    %c0_9 = arith.constant 0 : index
    %16 = vector.load %arg6[%c0_8, %c0_9] : memref<8x1xf32, #tpu.memory_space<vmem>>, vector<8x1xf32>
    %17 = arith.mulf %15, %16 : vector<8x1xf32>
    %18 = vector.broadcast %13 : vector<8x1xf32> to vector<8x8xf32>
    %19 = arith.subf %9, %18 : vector<8x8xf32>
    %20 = math.exp %19 : vector<8x8xf32>
    %cst_10 = arith.constant dense<0.000000e+00> : vector<8xf32>
    %21 = vector.multi_reduction <add>, %20, %cst_10 [1] : vector<8x8xf32> to vector<8xf32>
    %22 = vector.shape_cast %21 : vector<8xf32> to vector<8x1xf32>
    %23 = arith.addf %17, %22 : vector<8x1xf32>
    %c0_11 = arith.constant 0 : index
    %c0_12 = arith.constant 0 : index
    %24 = vector.load %arg6[%c0_11, %c0_12] : memref<8x1xf32, #tpu.memory_space<vmem>>, vector<8x1xf32>
    tpu.vector_store %arg6[%c0_11, %c0_12], %23 {strides = array<i32>} : memref<8x1xf32, #tpu.memory_space<vmem>>, vector<8x1xf32>,
    %c0_13 = arith.constant 0 : index
    %c0_14 = arith.constant 0 : index
    %25 = vector.load %arg5[%c0_13, %c0_14] : memref<8x1xf32, #tpu.memory_space<vmem>>, vector<8x1xf32>
    tpu.vector_store %arg5[%c0_13, %c0_14], %13 {strides = array<i32>} : memref<8x1xf32, #tpu.memory_space<vmem>>, vector<8x1xf32>,
    %c1_i32 = arith.constant 1 : i32
    %26 = arith.addi %arg0, %c1_i32 : i32
    %c2_i32 = arith.constant 2 : i32
    %c0_i32_15 = arith.constant 0 : i32
    %27 = arith.cmpi eq, %c2_i32, %c0_i32_15 : i32
    %c1_i32_16 = arith.constant 1 : i32
    %28 = arith.select %27, %c1_i32_16, %c2_i32 : i32
    %29 = arith.remsi %26, %28 : i32
    %c0_i32_17 = arith.constant 0 : i32
    %30 = arith.cmpi ne, %29, %c0_i32_17 : i32
    %c0_i32_18 = arith.constant 0 : i32
    %31 = arith.cmpi slt, %29, %c0_i32_18 : i32
    %c0_i32_19 = arith.constant 0 : i32
    %32 = arith.cmpi slt, %28, %c0_i32_19 : i32
    %33 = arith.xori %31, %32 : i1
    %34 = arith.andi %33, %30 : i1
    %35 = arith.addi %29, %28 : i32
    %36 = arith.select %34, %35, %29 : i32
    %37 = arith.cmpi eq, %arg1, %36 : i32
    %38 = arith.extui %37 : i1 to i32
    %c0_i32_20 = arith.constant 0 : i32
    %39 = arith.cmpi ne, %38, %c0_i32_20 : i32
    scf.if %39 {
      %43 = tpu.iota {dimensions = array<i32: 0>} : vector<8x8xi32>
      %44 = tpu.iota {dimensions = array<i32: 1>} : vector<8x8xi32>
      %45 = arith.cmpi eq, %43, %44 : vector<8x8xi32>
      %cst_23 = arith.constant 0.000000e+00 : f32
      %46 = vector.broadcast %cst_23 : f32 to vector<8x8xf32>
      %47 = arith.select %45, %9, %46 : vector<8x8xi1>, vector<8x8xf32>
      %cst_24 = arith.constant dense<0.000000e+00> : vector<8xf32>
      %48 = vector.multi_reduction <add>, %47, %cst_24 [1] : vector<8x8xf32> to vector<8xf32>
      %49 = vector.shape_cast %48 : vector<8xf32> to vector<8x1xf32>
      %c0_25 = arith.constant 0 : index
      %c0_26 = arith.constant 0 : index
      %50 = vector.load %arg7[%c0_25, %c0_26] : memref<8x1xf32, #tpu.memory_space<vmem>>, vector<8x1xf32>
      tpu.vector_store %arg7[%c0_25, %c0_26], %49 {strides = array<i32>} : memref<8x1xf32, #tpu.memory_space<vmem>>, vector<8x1xf32>,
    } else {
    }
    %c1_i32_21 = arith.constant 1 : i32
    %40 = arith.cmpi eq, %arg1, %c1_i32_21 : i32
    %41 = arith.extui %40 : i1 to i32
    %c0_i32_22 = arith.constant 0 : i32
    %42 = arith.cmpi ne, %41, %c0_i32_22 : i32
    scf.if %42 {
      %c0_23 = arith.constant 0 : index
      %c0_24 = arith.constant 0 : index
      %43 = vector.load %arg5[%c0_23, %c0_24] : memref<8x1xf32, #tpu.memory_space<vmem>>, vector<8x1xf32>
      %c0_25 = arith.constant 0 : index
      %c0_26 = arith.constant 0 : index
      %44 = vector.load %arg6[%c0_25, %c0_26] : memref<8x1xf32, #tpu.memory_space<vmem>>, vector<8x1xf32>
      %45 = math.log %44 : vector<8x1xf32>
      %46 = arith.addf %43, %45 : vector<8x1xf32>
      %c0_27 = arith.constant 0 : index
      %c0_28 = arith.constant 0 : index
      %47 = vector.load %arg7[%c0_27, %c0_28] : memref<8x1xf32, #tpu.memory_space<vmem>>, vector<8x1xf32>
      %48 = arith.subf %46, %47 : vector<8x1xf32>
      %c0_29 = arith.constant 0 : index
      %c0_30 = arith.constant 0 : index
      %49 = vector.load %arg4[%c0_29, %c0_30] : memref<8x1xf32, #tpu.memory_space<vmem>>, vector<8x1xf32>
      tpu.vector_store %arg4[%c0_29, %c0_30], %48 {strides = array<i32>} : memref<8x1xf32, #tpu.memory_space<vmem>>, vector<8x1xf32>,
    } else {
    }
    return
  }
  func.func @transform_0(%arg0: i32, %arg1: i32) -> (i32, i32) {
    %c0_i32 = arith.constant 0 : i32
    %c0_i32_0 = arith.constant 0 : i32
    return %arg0, %c0_i32 : i32, i32
  }
  func.func @transform_1(%arg0: i32, %arg1: i32) -> (i32, i32) {
    %c0_i32 = arith.constant 0 : i32
    %c0_i32_0 = arith.constant 0 : i32
    return %arg1, %c0_i32 : i32, i32
  }
  func.func @transform_2(%arg0: i32, %arg1: i32) -> (i32, i32) {
    %c0_i32 = arith.constant 0 : i32
    %c0_i32_0 = arith.constant 0 : i32
    return %arg0, %c0_i32 : i32, i32
  }
}

</mosaic_0001>

<bundles_post_ra>
// kernel: tpu_custom_call.1
= control target key start
LH: loop header
LB: loop body
LE: loop exit
PB: predicated region body
PF: predicated region fallthrough
CT: control target
= control target key end

     0   :  { %7 = vsyncpa [#allocation6], 0  ;;  %s1070_s0 = inlined_call_operand.hbm [shape: f32[16,128], index: 0, kind: input, shape index: {}]   ;;  %s1071_s1 = inlined_call_operand.hbm [shape: f32[16,128], index: 1, kind: input, shape index: {}]   ;;  %s1072_s2 = inlined_call_operand.vmem [shape: f32[16,1], index: 2, kind: output, shape index: {}]  }
   0x1   :  { %9 = vsyncpa [#allocation6 + $0x1], 0 }
   0x2   :  { %10 = vsyncpa [#allocation8], 0 }
   0x3   :  { %12 = vsyncpa [#allocation8 + $0x1], 0  ;;  %s797_s9 = smov 0   ;;  %s799_s10 = smov 0  }
   0x4   :  { %s801_s11 = smov 0   ;;  %s803_s12 = smov 0  }
   0x5   :  { %s805_s13 = smov 0   ;;  %s807_s14 = smov 0  }
   0x6   :  { %s809_s15 = smov 0   ;;  %s811_s16 = smov 0  }
   0x7   :  { %s813_s17 = smov 0   ;;  %s815_s18 = smov 0  }
   0x8   :  { %s817_s19 = smov 0  }
   0x9 LB: > { %s467_s20 = sadd.s32 4294967295, %s773_s19   ;;  %s30_s21 = sadd.s32 1, %s769_s18  ;;  %s773_s19 = sphi %s817_s19, %s18_s19   ;;  %s769_s18 = sphi %s815_s18, %s1099_s18   ;;  %s765_s17 = sphi %s813_s17, %s1098_s17   ;;  %s761_s16 = sphi %s811_s16, %s1097_s16   ;;  %s757_s15 = sphi %s809_s15, %s1096_s15   ;;  %s753_s14 = sphi %s807_s14, %s1095_s14   ;;  %s749_s13 = sphi %s805_s13, %s1094_s13   ;;  %s745_s12 = sphi %s803_s12, %s1093_s12   ;;  %s741_s11 = sphi %s801_s11, %s1092_s11   ;;  %s737_s10 = sphi %s799_s10, %s1091_s10   ;;  %s733_s9 = sphi %s797_s9, %s1090_s9  }
   0xa   : > { %p44_p0 = scmp.ne.s32.totalorder %s753_s14, %s749_s13  ;;  %p1074_p1 = scmp.eq.s32.totalorder %s773_s19, 0 }
   0xb   : > { %p50_p2 = scmp.ne.s32.totalorder %s749_s13, %s745_s12  ;;  %p856_p3 = scmp.eq.s32.totalorder %s467_s20, 0 }
   0xc   : > { %p46_p4 = por %p1074_p1, %p44_p0  ;;  %p1073_p5 = scmp.lt.s32.totalorder %s773_s19, 4 }
   0xd   : > { %p865_p6 = por %p856_p3, %p50_p2  ;;  %s126_s24 = sand.u32 1, %s753_s14  }
   0xe   : > { %s471_s25 = sshll.u32 %s126_s24, 3  ;;  %s472_s26 = sshll.u32 %s769_s18, 7 }
   0xf   : > { %s1078_s23 = scalar_select %p865_p6, 1, 0 }
  0x10   : > { %s874_s29 = scalar_lea.hbm %s1070_s0, %s472_s26  ;;  %s130_s30 = scalar_lea.vmem [#allocation5], %s471_s25 }
  0x11   : > { %s137_s3 = sshll.u32 %s130_s30, 4  ;;  %p880_p7 = pnand %p1073_p5, %p46_p4  ;;  %s876_s3 = int_to_ptr.vmem [resolvable:$true] %s137_s3 }
  0x12   : > { %s127_s5 = scalar_lea.sflag [#allocation6], %s126_s24  ;;  %s619_s6 = scalar_lea.hbm %s874_s29, 128 }
  0x13   : > { %p620_p10 = scmp.ne.s32.totalorder %s874_s29, %s619_s6  ;;  %p621_p11 = pneg %p880_p7 }
  0x14   : > { %s624_s12 = scalar_lea.hbm %s1070_s0, 256  ;;  %p625_p0 = scmp.lt.u32.totalorder %s874_s29, %s1070_s0 }
  0x15   : > { %p622_p12 = pnand %p621_p11, %p620_p10  ;;  %p626_p2 = scmp.lt.u32.totalorder %s624_s12, %s619_s6 }
  0x16   : > { %p628_p5 = scmp.lt.u32.totalorder %s619_s6, %s874_s29 }
  0x17   : > { %p623_p13 = pneg %p622_p12  ;;  %p627_p4 = por %p626_p2, %p625_p0 }
  0x19   : > { %p629_p1 = por %p628_p5, %p627_p4 }
  0x1b   : > { %p630_p8 = pnand %p629_p1, %p623_p13 }
  0x1d   : > { %633 = shalt.err (!%p630_p8)
}
  0x1e   : > { %s634_s24 = scalar_lea.vmem %s876_s3, 128  ;;  %s775_s26 = smov [#allocation5]  }
  0x1f   : > { %p635_p10 = scmp.ne.s32.totalorder %s876_s3, %s634_s24  ;;  %s639_s27 = sshll.u32 %s775_s26, 4  ;;  %s640_s27 = int_to_ptr.vmem [resolvable:$false] %s639_s27 }
  0x20   : > { %s641_s28 = scalar_lea.vmem %s640_s27, 256  ;;  %p642_p6 = scmp.lt.s32.totalorder %s876_s3, %s640_s27 }
  0x21   : > { %p637_p12 = pnand %p635_p10, %p621_p11  ;;  %p643_p0 = scmp.lt.s32.totalorder %s641_s28, %s634_s24 }
  0x23   : > { %p638_p9 = pneg %p637_p12  ;;  %p644_p2 = por %p643_p0, %p642_p6 }
  0x25   : > { %p645_p5 = pnand %p644_p2, %p638_p9 }
  0x27   : > { %648 = shalt.err (!%p645_p5)
}
  0x28   : > { %512 = dma.hbm_to_vmem [thread:$0]  (!%p880_p7), %s874_s29, 128, %s876_s3, %s127_s5  }
  0x29   : > { %p1080_p1 = scmp.lt.s32.totalorder %s773_s19, 5  ;;  %p1081_p6 = scmp.ge.s32.totalorder %s773_s19, 1 }
  0x2a   : > { %s37_s4 = sadd.s32 1, %s753_s14  ;;  %s27_s6 = sadd.s32 1, %s765_s17 }
  0x2b   : > { %p915_p8 = pnand %p1081_p6, %p1080_p1  ;;  %p28_p9 = scmp.ge.s32.totalorder %s27_s6, 2 }
  0x2c   : > { %s63_s7 = sadd.s32 1, %s741_s11  ;;  %p70_p11 = scmp.ne.s32.totalorder %s741_s11, %s737_s10 }
  0x2d   : > { %p76_p13 = scmp.ne.s32.totalorder %s737_s10, %s733_s9  ;;  %s1101_s6 = smov (%p28_p9, %s27_s6), 0 }
  0x2e   : > { %s1103_s21 = smov (!%p28_p9, %s30_s21), %s769_s18  ;;  %s60_s29 = ssub.s32 %s765_s17, %s1101_s6 }
  0x2f   : > { %s144_s3 = sand.u32 1, %s741_s11   ;;  %p32_p7 = scmp.ge.s32.totalorder %s1103_s21, 2 }
  0x30   : > { %p61_p4 = scmp.eq.s32.totalorder %s60_s29, 0  ;;  %p1083_p10 = scmp.eq.s32.totalorder %s773_s19, 0 }
  0x31   : > { %p942_p0 = por %p76_p13, %p856_p3  ;;  %s1105_s21 = smov (%p32_p7, %s1103_s21), 0 }
  0x32   : > { %p936_p12 = por %p70_p11, %p1083_p10  ;;  %s34_s12 = ssub.s32 %s769_s18, %s1105_s21 }
  0x33   : > { %s1085_s9 = scalar_select %p942_p0, 1, 0 }
  0x34   : > { %s949_s8 = scalar_select %p61_p4, %s741_s11, %s63_s7  }
  0x35   : > { %s473_s20 = sshll.u32 %s144_s3, 3  ;;  %p35_p2 = scmp.eq.s32.totalorder %s34_s12, 0 }
  0x36   : > { %s474_s25 = sshll.u32 %s765_s17, 7  ;;  %s148_s24 = scalar_lea.vmem [#allocation7], %s473_s20 }
  0x37   : > { %s155_s26 = sshll.u32 %s148_s24, 4  ;;  %s960_s29 = scalar_lea.hbm %s1071_s1, %s474_s25  ;;  %s962_s26 = int_to_ptr.vmem [resolvable:$true] %s155_s26 }
  0x38   : > { %s955_s27 = scalar_select %p35_p2, %s753_s14, %s37_s4  }
  0x39   : > { %p1086_p3 = scmp.lt.s32.totalorder %s773_s19, 4  ;;  %s145_s4 = scalar_lea.sflag [#allocation8], %s144_s3 }
  0x3a   : > { %s649_s12 = scalar_lea.hbm %s960_s29, 128  ;;  %s654_s5 = scalar_lea.hbm %s1071_s1, 256 }
  0x3b   : > { %p968_p5 = pnand %p1086_p3, %p936_p12  ;;  %p650_p1 = scmp.ne.s32.totalorder %s960_s29, %s649_s12 }
  0x3c   : > { %p655_p13 = scmp.lt.u32.totalorder %s960_s29, %s1071_s1  ;;  %p656_p7 = scmp.lt.u32.totalorder %s654_s5, %s649_s12 }
  0x3d   : > { %p651_p6 = pneg %p968_p5  ;;  %p658_p10 = scmp.lt.u32.totalorder %s649_s12, %s960_s29 }
  0x3e   : > { %p657_p4 = por %p656_p7, %p655_p13 }
  0x3f   : > { %p652_p9 = pnand %p651_p6, %p650_p1 }
  0x40   : > { %p659_p12 = por %p658_p10, %p657_p4 }
  0x41   : > { %p653_p11 = pneg %p652_p9 }
  0x43   : > { %p660_p2 = pnand %p659_p12, %p653_p11 }
  0x45   : > { %663 = shalt.err (!%p660_p2)
}
  0x46   : > { %s664_s3 = scalar_lea.vmem %s962_s26, 128  ;;  %s776_s22 = smov [#allocation7]  }
  0x47   : > { %p665_p3 = scmp.ne.s32.totalorder %s962_s26, %s664_s3  ;;  %s669_s20 = sshll.u32 %s776_s22, 4  ;;  %s670_s20 = int_to_ptr.vmem [resolvable:$false] %s669_s20 }
  0x48   : > { %s671_s25 = scalar_lea.vmem %s670_s20, 256  ;;  %p672_p0 = scmp.lt.s32.totalorder %s962_s26, %s670_s20 }
  0x49   : > { %p667_p1 = pnand %p665_p3, %p651_p6  ;;  %p673_p13 = scmp.lt.s32.totalorder %s671_s25, %s664_s3 }
  0x4b   : > { %p668_p9 = pneg %p667_p1  ;;  %p674_p7 = por %p673_p13, %p672_p0 }
  0x4d   : > { %p675_p4 = pnand %p674_p7, %p668_p9 }
  0x4f   : > { %678 = shalt.err (!%p675_p4)
}
  0x50   : > { %515 = dma.hbm_to_vmem [thread:$0]  (!%p968_p5), %s960_s29, 128, %s962_s26, %s145_s4  }
  0x51   : > { %164 = sbr.rel (%p915_p8) target bundleno = 782 (0x30e), region = 28  ;;  %s166_s12 = sand.u32 (!%p915_p8), 1, %s749_s13  }
  0x52   : > { %s1000_s5 = sshll.u32 (!%p915_p8), %s166_s12, 3  ;;  %s167_s24 = scalar_lea.sflag (!%p915_p8), [#allocation6], %s166_s12 }
  0x53   : > { %s170_s28 = scalar_lea.vmem (!%p915_p8), [#allocation5], %s1000_s5  ;;  %p1088_p6 = scmp.ne.s32.totalorder (!%p915_p8), %s1078_s23, 0 }
  0x58   : > { %724 = dma.done.wait (%p1088_p6), %s167_s24, 128  }
  0x59   : > { %726 = vsyncadd (%p1088_p6), %s167_s24, 4294967168  ;;  %s175_s7 = sand.u32 1, %s737_s10   ;;  %p1089_p8 = scmp.ne.s32.totalorder %s1085_s9, 0 }
  0x5a   : > { %s477_s26 = sshll.u32 %s175_s7, 3  ;;  %s176_s29 = scalar_lea.sflag [#allocation8], %s175_s7 }
  0x5b   : > { %s179_s30 = scalar_lea.vmem [#allocation7], %s477_s26 }
  0x5c   : > { %728 = dma.done.wait (%p1089_p8), %s176_s29, 128  }
  0x5d   : > { %730 = vsyncadd (%p1089_p8), %s176_s29, 4294967168  ;;  %p204_p0 = scmp.lt.s32.totalorder %s761_s16, 1  ;;  %p479_p5 = scmp.ne.s32.totalorder %s757_s15, 0 }
  0x5e   : > { %vm212_vm0 = vcmask (!%p479_p5), 7168   ;;  %v777_v0 = vmov (!%p479_p5), -1e+30   ;;  %v778_v1 = vmov (!%p479_p5), 0.0  }
  0x5f   : > { %s205_s4 = scalar_select %p204_p0, %s761_s16, 1 }
  0x60   : > { %211 = sbr.rel (%p479_p5) target bundleno = 103 (0x67), region = 40  ;;  %213 = vst.msk [vmem:[#allocation2] sm:$0xff] (!%p479_p5), %vm212_vm0, %v777_v0  ;;  %214 = vst.msk [vmem:[#allocation3] sm:$0xff] (!%p479_p5), %vm212_vm0, %v778_v1 }
  0x61   : > { %s478_s3 = sshll.u32 %s205_s4, 3  ;;  %215 = vst.msk [vmem:[#allocation4] sm:$0xff] (!%p479_p5), %vm212_vm0, %v778_v1 }
  0x62   : > { %s1017_s23 = scalar_lea.vmem %s1072_s2, %s478_s3 }
  0x67 PF: > { %v217_v2 = vld [vmem:[%s179_s30] sm:$0xff]  ;;  %v779_v3 = vmov 0.0   ;;  %vm780_vm1 = vmmov 0   ;;  %v216_v4 = vld [vmem:[%s170_s28] sm:$0xff]  ;;  %p288_p11 = scmp.eq.s32.totalorder %s761_s16, %s757_s15  ;;  %p480_p10 = scmp.ne.s32.totalorder %s761_s16, %s757_s15  ;;  %v292_v5 = vlaneseq  ;;  %vm304_vm5 = vcmask 64512  }
  0x68   : > { %490 = vmatprep.subr.mxu0 %v779_v3  ;;  %492 = vmatprep.mubr.msk.f32.mxu0 %vm780_vm1, %v779_v3  ;;  %v781_v16 = vmov 0   ;;  %v303_v17 = vld [vmem:[#allocation2] sm:$0xff]  ;;  %vm326_vm6 = vcmask 7168   ;;  %s329_s12 = sadd.s32 1, %s761_s16  ;;  %v312_v28 = vld [vmem:[#allocation3] sm:$0xff] }
  0x69   : > { %491 = vmatpush3.xpose.msra.mxu0 %v217_v2  ;;  %s500_s9 = scalar_select %p288_p11, 1, 0  ;;  %v293_v6 = vshrl.u32 %v292_v5, 7  ;;  %v295_v7 = vand.u32 127, %v292_v5  ;;  %612 = vset.pattern.permute.xlu0 %v781_v16 }
  0x6a   : > { %s505_s25 = scalar_select %p480_p10, 1, 0 }
  0x6b   : > { %v501_v8 = vstv %s500_s9  ;;  %vm296_vm2 = vcmp.eq.s32.totalorder %v293_v6, %v295_v7  ;;  %s331_s5 = ssub.s32 0, %s329_s12  ;;  %p330_p12 = scmp.lt.s32.totalorder %s329_s12, 0 }
  0x6c   : > { %493 = vmatmul.mubr.f32.vlgmr.msra.gmra.mrb[0].mxu0 %v216_v4  ;;  %v506_v9 = vstv %s505_s25  ;;  %vm502_vm3 = vcmp.ne.s32.totalorder %v501_v8, 0  ;;  %s481_s24 = smin.u32 %s331_s5, %s329_s12 }
  0x6d   : > { %vm507_vm4 = vcmp.ne.s32.totalorder %v506_v9, 0  ;;  %s333_s28 = sand.u32 1, %s481_s24  }
  0x6e   : > { %s334_s7 = ssub.s32 0, %s333_s28 }
  0x6f   : > { %s1107_s7 = smov (!%p330_p12, %s334_s7), %s333_s28 }
  0x70   : > { %p483_p2 = scmp.lt.s32.totalorder %s1107_s7, 0  ;;  %s340_s26 = sadd.s32 2, %s1107_s7 }
  0x72   : > { %s1109_s26 = smov (!%p483_p2, %s340_s26), %s1107_s7 }
  0x73   : > { %p484_p3 = scmp.ne.s32.totalorder %s757_s15, %s1109_s26 }
 0x13f   : > { %v284_v10 = vpop.f32.mrb[0].mxu0 }
 0x140   : > { %v297_v11 = vsel %vm296_vm2, -1e+30, %v284_v10  ;;  %v494_v12 = vpop.f32.mrb[1].mxu0 }
 0x141   : > { %v503_v13 = vsel %vm502_vm3, %v297_v11, 0 }
 0x142   : > { %v508_v14 = vsel %vm507_vm4, %v284_v10, %v503_v13 }
 0x143   : > { %v305_v15 = vsel %vm304_vm5, %v508_v14, -inf  ;;  %v351_v32 = vsel (!%p484_p3), %vm296_vm2, %v508_v14, 0.0 }
 0x144   : > { %306 = vmax.xlane.f32.xlu0 %v305_v15  ;;  %v352_v33 = vsel (!%p484_p3), %vm304_vm5, %v351_v32, 0.0 }
 0x1d1   : > { %v307_v18 = vpop.xlane.xlu0 %306 }
 0x1d2   : > { %v308_v19 = vmax.f32 %v303_v17, %v307_v18 }
 0x1d4   : > { %v309_v20 = vsub.f32 %v303_v17, %v308_v19  ;;  %328 = vst.msk [vmem:[#allocation2] sm:$0xff] %vm326_vm6, %v308_v19  ;;  %316 = vperm.xlu0 %612, %v308_v19  }
 0x1d6   : > { %v310_v26 = vmul.f32 1.442695, %v309_v20 }
 0x1f3   : > { %353 = vadd.xlane.f32.xlu0 (!%p484_p3), %v352_v33 }
 0x253   : > { %v317_v21 = vpop.permute.xlu0 %316 }
 0x254   : > { %v319_v22 = vsub.f32 %v508_v14, %v317_v21 }
 0x256   : > { %v320_v23 = vmul.f32 1.442695, %v319_v22 }
 0x258   : > { %613 = vpow2.f32 %v320_v23 }
 0x259   : > { %615 = vpow2.f32 %v310_v26 }
 0x262   : > { %v614_v24 = vpop.eup %613 }
 0x263   : > { %v322_v25 = vsel %vm304_vm5, %v614_v24, 0.0  ;;  %v616_v27 = vpop.eup %615 }
 0x264   : > { %323 = vadd.xlane.f32.xlu1 %v322_v25  ;;  %v313_v29 = vmul.f32 %v616_v27, %v312_v28 }
 0x280   : > { %v354_v34 = vpop.xlane.xlu0 (!%p484_p3), %353 }
 0x281   : > { %355 = vst.msk [vmem:[#allocation4] sm:$0xff] (!%p484_p3), %vm326_vm6, %v354_v34 }
 0x2ee   : > { %345 = sbr.rel (%p484_p3) target bundleno = 757 (0x2f5), region = 52 }
 0x2f1   : > { %v324_v30 = vpop.xlane.xlu1 %323 }
 0x2f2   : > { %v325_v31 = vadd.f32 %v324_v30, %v313_v29 }
 0x2f4   : > { %327 = vst.msk [vmem:[#allocation3] sm:$0xff] %vm326_vm6, %v325_v31 }
 0x2f5 PF: > { %p485_p1 = scmp.ne.s32.totalorder %s757_s15, 1 }
 0x2f6   : > { %v360_v37 = vld [vmem:[#allocation2] sm:$0xff] (!%p485_p1)  ;;  %v365_v39 = vld [vmem:[#allocation4] sm:$0xff] (!%p485_p1) }
 0x2f7   : > { %359 = sbr.rel (%p485_p1) target bundleno = 782 (0x30e), region = 56 }
 0x2fb   : > { %v361_v35 = vld [vmem:[#allocation3] sm:$0xff] (!%p485_p1) }
 0x2fc   : > { %617 = vlog2.f32 (!%p485_p1), %v361_v35 }
 0x306   : > { %v618_v36 = vpop.eup %617 }
 0x307   : > { %v363_v38 = vmul.f32 0.6931472, %v618_v36 }
 0x309   : > { %v364_v40 = vadd.f32 %v363_v38, %v360_v37 }
 0x30b   : > { %v366_v41 = vsub.f32 %v364_v40, %v365_v39 }
 0x30d   : > { %367 = vst.msk [vmem:[%s1017_s23] sm:$0xff] %vm326_vm6, %v366_v41 }
 0x30e PF: > { %s18_s19 = sadd.s32 1, %s773_s19   ;;  %s1090_s9 = smov %s737_s10 }
 0x30f   : > { %p15_p9 = scmp.ge.s32.totalorder %s18_s19, 6   ;;  %s1091_s10 = smov %s741_s11 }
 0x310   : > { %s1092_s11 = smov %s949_s8  ;;  %s1093_s12 = smov %s749_s13 }
 0x311   : > { %s1094_s13 = smov %s753_s14  ;;  %s1095_s14 = smov %s955_s27 }
 0x312   : > { %s1096_s15 = smov %s765_s17  ;;  %s1097_s16 = smov %s769_s18 }
 0x313   : > { %s1098_s17 = smov %s1101_s6  ;;  %s1099_s18 = smov %s1105_s21 }
 0x314   :  { %17 = sbr.rel (!%p15_p9) target bundleno = 9 (0x9), region = 101 }
 0x31b   :  { %387 = vsyncpa [#allocation6], 1 }
 0x31c   :  { %389 = vsyncpa [#allocation6 + $0x1], 1 }
 0x31d   :  { %390 = vsyncpa [#allocation8], 1 }
 0x31e   :  { %392 = vsyncpa [#allocation8 + $0x1], 1 }

</bundles_post_ra>
